<compile_context>
chip_gen: v5e
topology: v5e:2x2
jax: 0.10.0
libtpu: 0.0.40
codegen_flags: <defaults>
</compile_context>

<pallas_src>
import functools
import math

import jax
import jax.numpy as jnp
import numpy as np
from jax import lax
from jax.experimental import pallas as pl
from jax.experimental.pallas import tpu as pltpu  # noqa: F401

D_MODEL = 32
CONTEXT_WINDOW = 16
BATCH = 2

_NEG_LARGE = -1e30  # finite "minus infinity" -> NaN-safe masking


def rope_attn_kernel(x_ref, wqkv_ref, tab_ref, o_ref, *, d, bm):
    """Single invocation over all batches. x_ref: (bm, d) with bm = b*m."""
    x = x_ref[...]                                                # (bm, d)

    # Fused QKV projection: wqkv = [Wq^T/sqrt(d) | Wk^T | Wv^T]; q/k columns
    # are already permuted host-side into the de-interleaved (rotate-half) basis.
    qkv = jnp.dot(x, wqkv_ref[...], preferred_element_type=jnp.float32)  # (bm, 3d)
    q = qkv[:, 0 * d:1 * d]
    k = qkv[:, 1 * d:2 * d]
    v = qkv[:, 2 * d:3 * d]

    # Packed constant slab: [cos | signed-sin | mask bias].
    cos = tab_ref[:, 0 * d:1 * d]                                 # (bm, d)
    sin = tab_ref[:, 1 * d:2 * d]                                 # (bm, d)
    bias = tab_ref[:, 2 * d:2 * d + bm]                           # (bm, bm)

    half = d // 2

    def rotate_half(t):
        # Static half-rotation (lane rotate on the XLU after lowering).
        return jnp.concatenate([t[:, half:], t[:, :half]], axis=-1)

    # RoPE in the de-interleaved basis: t*cos + rotate_half(t)*signed_sin.
    q_rot = q * cos + rotate_half(q) * sin
    k_rot = k * cos + rotate_half(k) * sin

    # Scores over the flattened (batch*seq) axis, contraction on d.
    # NOTE: NT contraction; at (32,32) any hidden transpose of k_rot is a
    # single-vreg XLU op and is negligible.
    scores = lax.dot_general(q_rot, k_rot, (((1,), (1,)), ((), ())),
                             preferred_element_type=jnp.float32)  # (bm, bm)

    # Precomputed block-diagonal (same batch) + causal mask, additive form.
    scores = scores + bias

    # Softmax with exact normalization (operand is one (bm, 1) column).
    scores = scores - jnp.max(scores, axis=-1, keepdims=True)
    p = jnp.exp(scores)
    p = p / jnp.sum(p, axis=-1, keepdims=True)
    # TODO(synk): dropout_p=0.1 from F.scaled_dot_product_attention is omitted
    # (deterministic / eval-mode semantics).

    o_ref[...] = jnp.dot(p, v, preferred_element_type=jnp.float32).astype(o_ref.dtype)


def rope_masked_attention(x, w_qkv, tables):
    """x: (b, m, d); w_qkv: (d, 3d); tables: (b*m, 2d + b*m)."""
    b, m, d = x.shape
    bm = b * m
    x2d = x.reshape(bm, d)
    out2d = pl.pallas_call(
        functools.partial(rope_attn_kernel, d=d, bm=bm),
        out_shape=jax.ShapeDtypeStruct((bm, d), x.dtype),
    )(x2d, w_qkv, tables)
    return out2d.reshape(b, m, d)


# ---------------- host-side parameter / table construction -------------------

def _rope_angles(context_window, embedding_dim):
    i_arr = np.arange(embedding_dim // 2)
    # NOTE: the 10000^(-2*(i-1)/d) '(i-1)' quirk is intentionally copied from
    # the PyTorch module; do not "fix" it or the kernel diverges from spec.
    theta = 10000.0 ** (-2.0 * (i_arr - 1) / embedding_dim)
    pos = np.arange(context_window)
    return pos[:, None] * theta[None, :]                          # (m, d//2)


def make_constant_slab(batch, context_window, embedding_dim):
    """[cos | signed-sin | mask-bias] packed into a single (b*m, 2d+b*m) slab."""
    m, d = context_window, embedding_dim
    bm = batch * m
    ang = _rope_angles(m, d)
    cos_half, sin_half = np.cos(ang), np.sin(ang)
    # Rotate-half basis: cos duplicated, sin with sign flip on the second half.
    cos_tab = np.concatenate([cos_half, cos_half], axis=-1)       # (m, d)
    sin_tab = np.concatenate([sin_half, -sin_half], axis=-1)      # (m, d)
    cos_big = np.tile(cos_tab, (batch, 1)).astype(np.float32)     # (bm, d)
    sin_big = np.tile(sin_tab, (batch, 1)).astype(np.float32)     # (bm, d)

    row = np.arange(bm)[:, None]
    col = np.arange(bm)[None, :]
    keep = (row // m == col // m) & (col <= row)                  # block-diag & causal
    bias = np.where(keep, 0.0, _NEG_LARGE).astype(np.float32)     # (bm, bm)

    return jnp.asarray(np.concatenate([cos_big, sin_big, bias], axis=-1))


def make_fused_qkv(Wq, Wk, Wv):
    """[Wq^T/sqrt(d) | Wk^T | Wv^T] with q/k columns de-interleaved (even|odd)."""
    d = Wq.shape[0]
    perm = np.concatenate([np.arange(0, d, 2), np.arange(1, d, 2)])
    wq_t = (Wq.T / math.sqrt(d))[:, perm]      # fold 1/sqrt(d) attention scale
    wk_t = Wk.T[:, perm]
    wv_t = Wv.T
    return jnp.concatenate([wq_t, wk_t, wv_t], axis=-1).astype(jnp.float32)


# ---------------- pure-JAX reference of the PyTorch forward ------------------

def get_rotary_matrix(context_window, embedding_dim):
    """Exact copy of the PyTorch module's R construction."""
    R = np.zeros((context_window, embedding_dim, embedding_dim), dtype=np.float32)
    for position in range(context_window):
        for i in range(embedding_dim // 2):
            theta = 10000.0 ** (-2.0 * (i - 1) / embedding_dim)
            m_theta = position * theta
            R[position, 2 * i, 2 * i] = np.cos(m_theta)
            R[position, 2 * i, 2 * i + 1] = -np.sin(m_theta)
            R[position, 2 * i + 1, 2 * i] = np.sin(m_theta)
            R[position, 2 * i + 1, 2 * i + 1] = np.cos(m_theta)
    return jnp.asarray(R)


def reference_forward(x, Wq, Wk, Wv, R):
    """Pure-JAX replica of the PyTorch forward (no dropout)."""
    b, m, d = x.shape
    q = x @ Wq.T
    k = x @ Wk.T
    v = x @ Wv.T
    q_rot = jnp.einsum('bmd,mde->bme', q, R[:m])
    k_rot = jnp.einsum('bmd,mde->bme', k, R[:m])
    scores = jnp.einsum('bqd,bkd->bqk', q_rot, k_rot) / jnp.sqrt(jnp.float32(d))
    mask = jnp.tril(jnp.ones((m, m), dtype=bool))
    scores = jnp.where(mask[None], scores, -jnp.inf)
    w = jax.nn.softmax(scores, axis=-1)
    return jnp.einsum('bqk,bkd->bqd', w, v)


if __name__ == "__main__":
    key = jax.random.PRNGKey(0)
    kx, kq, kk, kv = jax.random.split(key, 4)

    b, m, d = BATCH, CONTEXT_WINDOW, D_MODEL
    x = jax.random.normal(kx, (b, m, d), dtype=jnp.float32)

    # nn.Linear(d, d, bias=False) weights, shape (out, in); deterministic init.
    Wq = 0.02 * jax.random.normal(kq, (d, d), dtype=jnp.float32)
    Wk = 0.02 * jax.random.normal(kk, (d, d), dtype=jnp.float32)
    Wv = 0.02 * jax.random.normal(kv, (d, d), dtype=jnp.float32)

    # One-time host-side parameter prep (fusion, permutation, scale folding).
    w_qkv = make_fused_qkv(Wq, Wk, Wv)              # (d, 3d)
    tables = make_constant_slab(b, m, d)            # (b*m, 2d + b*m)

    out = jax.block_until_ready(rope_masked_attention(x, w_qkv, tables))

    ref = jax.block_until_ready(
        reference_forward(x, Wq, Wk, Wv, get_rotary_matrix(m, d)))
    np.testing.assert_allclose(np.asarray(out), np.asarray(ref),
                               rtol=1e-4, atol=1e-5)

    print("KERNEL_OK")
</pallas_src>

<mosaic_0001>
module attributes {stable_mosaic.version = 11 : i64} {
  func.func @rope_attn_kernel(%arg0: memref<32x32xf32, #tpu.memory_space<vmem>>, %arg1: memref<32x96xf32, #tpu.memory_space<vmem>>, %arg2: memref<32x96xf32, #tpu.memory_space<vmem>>, %arg3: memref<32x32xf32, #tpu.memory_space<vmem>>) attributes {dimension_semantics = [], scalar_prefetch = 0 : i64, scratch_operands = 0 : i64, tpu.core_type = #tpu.core_type<tc>} {
    %c0 = arith.constant 0 : index
    %c0_0 = arith.constant 0 : index
    %0 = vector.load %arg0[%c0, %c0_0] : memref<32x32xf32, #tpu.memory_space<vmem>>, vector<32x32xf32>
    %c0_1 = arith.constant 0 : index
    %c0_2 = arith.constant 0 : index
    %1 = vector.load %arg1[%c0_1, %c0_2] : memref<32x96xf32, #tpu.memory_space<vmem>>, vector<32x96xf32>
    %cst = arith.constant dense<0.000000e+00> : vector<32x96xf32>
    %2 = tpu.matmul %0, %1, %cst {dimension_numbers = #tpu.dot_dimension_numbers<[1], [0], [0], [1], [0, 0, 1, 1], [], []>} : vector<32x32xf32>, vector<32x96xf32>, vector<32x96xf32> -> vector<32x96xf32>
    %3 = vector.extract_strided_slice %2 {offsets = [0, 0], sizes = [32, 32], strides = [1, 1]} : vector<32x96xf32> to vector<32x32xf32>
    %4 = vector.extract_strided_slice %2 {offsets = [0, 32], sizes = [32, 32], strides = [1, 1]} : vector<32x96xf32> to vector<32x32xf32>
    %5 = vector.extract_strided_slice %2 {offsets = [0, 64], sizes = [32, 32], strides = [1, 1]} : vector<32x96xf32> to vector<32x32xf32>
    %c0_3 = arith.constant 0 : index
    %c0_4 = arith.constant 0 : index
    %6 = vector.load %arg2[%c0_3, %c0_4] : memref<32x96xf32, #tpu.memory_space<vmem>>, vector<32x32xf32>
    %c0_5 = arith.constant 0 : index
    %c32 = arith.constant 32 : index
    %7 = vector.load %arg2[%c0_5, %c32] : memref<32x96xf32, #tpu.memory_space<vmem>>, vector<32x32xf32>
    %c0_6 = arith.constant 0 : index
    %c64 = arith.constant 64 : index
    %8 = vector.load %arg2[%c0_6, %c64] : memref<32x96xf32, #tpu.memory_space<vmem>>, vector<32x32xf32>
    %9 = arith.mulf %3, %6 : vector<32x32xf32>
    %10 = vector.extract_strided_slice %3 {offsets = [0, 16], sizes = [32, 16], strides = [1, 1]} : vector<32x32xf32> to vector<32x16xf32>
    %11 = vector.extract_strided_slice %3 {offsets = [0, 0], sizes = [32, 16], strides = [1, 1]} : vector<32x32xf32> to vector<32x16xf32>
    %12 = tpu.concatenate %10, %11 in 1 : vector<32x16xf32>, vector<32x16xf32> -> vector<32x32xf32>
    %13 = arith.mulf %12, %7 : vector<32x32xf32>
    %14 = arith.addf %9, %13 : vector<32x32xf32>
    %15 = arith.mulf %4, %6 : vector<32x32xf32>
    %16 = vector.extract_strided_slice %4 {offsets = [0, 16], sizes = [32, 16], strides = [1, 1]} : vector<32x32xf32> to vector<32x16xf32>
    %17 = vector.extract_strided_slice %4 {offsets = [0, 0], sizes = [32, 16], strides = [1, 1]} : vector<32x32xf32> to vector<32x16xf32>
    %18 = tpu.concatenate %16, %17 in 1 : vector<32x16xf32>, vector<32x16xf32> -> vector<32x32xf32>
    %19 = arith.mulf %18, %7 : vector<32x32xf32>
    %20 = arith.addf %15, %19 : vector<32x32xf32>
    %cst_7 = arith.constant dense<0.000000e+00> : vector<32x32xf32>
    %21 = tpu.matmul %14, %20, %cst_7 {dimension_numbers = #tpu.dot_dimension_numbers<[1], [1], [0], [0], [0, 0, 1, 0], [], []>} : vector<32x32xf32>, vector<32x32xf32>, vector<32x32xf32> -> vector<32x32xf32>
    %22 = arith.addf %21, %8 : vector<32x32xf32>
    %cst_8 = arith.constant dense<0xFF800000> : vector<32xf32>
    %23 = vector.multi_reduction <maximumf>, %22, %cst_8 [1] : vector<32x32xf32> to vector<32xf32>
    %24 = vector.shape_cast %23 : vector<32xf32> to vector<32x1xf32>
    %25 = vector.broadcast %24 : vector<32x1xf32> to vector<32x32xf32>
    %26 = arith.subf %22, %25 : vector<32x32xf32>
    %27 = math.exp %26 : vector<32x32xf32>
    %cst_9 = arith.constant dense<0.000000e+00> : vector<32xf32>
    %28 = vector.multi_reduction <add>, %27, %cst_9 [1] : vector<32x32xf32> to vector<32xf32>
    %29 = vector.shape_cast %28 : vector<32xf32> to vector<32x1xf32>
    %30 = vector.broadcast %29 : vector<32x1xf32> to vector<32x32xf32>
    %31 = arith.divf %27, %30 : vector<32x32xf32>
    %cst_10 = arith.constant dense<0.000000e+00> : vector<32x32xf32>
    %32 = tpu.matmul %31, %5, %cst_10 {dimension_numbers = #tpu.dot_dimension_numbers<[1], [0], [0], [1], [0, 0, 1, 1], [], []>} : vector<32x32xf32>, vector<32x32xf32>, vector<32x32xf32> -> vector<32x32xf32>
    %c0_11 = arith.constant 0 : index
    %c0_12 = arith.constant 0 : index
    %33 = vector.load %arg3[%c0_11, %c0_12] : memref<32x32xf32, #tpu.memory_space<vmem>>, vector<32x32xf32>
    tpu.vector_store %arg3[%c0_11, %c0_12], %32 {strides = array<i32>} : memref<32x32xf32, #tpu.memory_space<vmem>>, vector<32x32xf32>,
    return
  }
}

</mosaic_0001>

<bundles_post_ra>
// kernel: tpu_custom_call.1
= control target key start
LH: loop header
LB: loop body
LE: loop exit
PB: predicated region body
PF: predicated region fallthrough
CT: control target
= control target key end

     0   :  { %8 = vsyncpa [#allocation3], 0  ;;  %s845_s0 = inlined_call_operand.hbm [shape: f32[32,32], index: 0, kind: input, shape index: {}]   ;;  %s846_s1 = inlined_call_operand.hbm [shape: f32[32,96], index: 1, kind: input, shape index: {}]   ;;  %s847_s2 = inlined_call_operand.hbm [shape: f32[32,96], index: 2, kind: input, shape index: {}]   ;;  %s848_s3 = inlined_call_operand.hbm [shape: f32[32,32], index: 3, kind: output, shape index: {}]  }
   0x1   :  { %9 = vsyncpa [#allocation6], 0 }
   0x2   :  { %10 = vsyncpa [#allocation4], 0  ;;  %s28_s14 = sshll.u32 %s846_s1, 4  ;;  %s639_s15 = smov [#allocation5]   ;;  %s29_s14 = int_to_ptr.hbm [resolvable:$true] %s28_s14 }
   0x3   :  { %s30_s16 = sshll.u32 %s639_s15, 4  ;;  %s15_s19 = sshll.u32 %s845_s0, 4  ;;  %s31_s16 = int_to_ptr.vmem [resolvable:$true] %s30_s16  ;;  %s16_s19 = int_to_ptr.hbm [resolvable:$true] %s15_s19 }
   0x4   :  { %s640_s20 = smov 128   ;;  %s641_s21 = smov 8  }
   0x5   :  { %36 = dma.hbm_to_vmem [thread:$0]  %s29_s14, 512, %s31_s16, [#allocation6], %s640_s20, %s640_s20, %s641_s21  }
   0x6   :  { %s642_s22 = smov [#allocation2]   ;;  %s41_s1 = sshll.u32 %s847_s2, 4  ;;  %s42_s1 = int_to_ptr.hbm [resolvable:$true] %s41_s1 }
   0x7   :  { %s17_s23 = sshll.u32 %s642_s22, 4  ;;  %s643_s0 = smov [#allocation7]   ;;  %s18_s23 = int_to_ptr.vmem [resolvable:$true] %s17_s23 }
   0x8   :  { %23 = dma.hbm_to_vmem [thread:$0]  %s16_s19, 512, %s18_s23, [#allocation3], %s640_s20, %s640_s20, %s641_s21  }
   0x9   :  { %s43_s26 = sshll.u32 %s643_s0, 4  ;;  %s44_s26 = int_to_ptr.vmem [resolvable:$true] %s43_s26 }
   0xa   :  { %49 = dma.hbm_to_vmem [thread:$0]  %s42_s1, 512, %s44_s26, [#allocation6], %s640_s20, %s640_s20, %s641_s21  }
   0xb   :  { %633 = dma.done.wait [#allocation3], 512  }
   0xc   :  { %634 = vsyncadd [#allocation3], 4294966784 }
   0xd   :  { %635 = dma.done.wait [#allocation6], 1024  }
   0xe   :  { %636 = vsyncadd [#allocation6], 4294966272  ;;  %v69_v0 = vld [vmem:[#allocation5 + $0x18] sm:$0xff]  ;;  %v68_v1 = vld [vmem:[#allocation5 + $0x10] sm:$0xff]  ;;  %vm70_vm0 = vcmask 261120   ;;  %s644_s2 = smov 96  }
   0xf   :  { %95 = vmatpush.msra.mxu0 %v69_v0  ;;  %v67_v2 = vld [vmem:[#allocation5 + $0x8] sm:$0xff]  ;;  %v66_v3 = vld [vmem:[#allocation5] sm:$0xff]  ;;  %v64_v6 = vld [vmem:[#allocation2 + $0x10] sm:$0xff]  ;;  %s645_s27 = smov 80   ;;  %s646_s28 = smov 112   ;;  %vm148_vm1 = vcmask 130048  }
  0x10   :  { %v62_v4 = vld [vmem:[#allocation2] sm:$0xff]  ;;  %v63_v5 = vld [vmem:[#allocation2 + $0x8] sm:$0xff]  ;;  %v65_v7 = vld [vmem:[#allocation2 + $0x18] sm:$0xff]  ;;  %s647_s29 = smov 32   ;;  %s648_s30 = smov 16  }
  0x11   :  { %96 = vmatpush.msra.mxu0 %v68_v1  ;;  %v693_v8 = vld [vmem:[#allocation7 + $0x18] sm:$0xff]  ;;  %v695_v9 = vld [vmem:[#allocation7 + $0x10] sm:$0xff]  ;;  %v711_v14 = vld [vmem:[#allocation7 + $0x8] sm:$0xff]  ;;  %s649_s4 = smov 64   ;;  %s650_s5 = smov [#allocation8]  }
  0x12   :  { %163 = vrot.lane.b32.xlu1 %v693_v8, %s644_s2  ;;  %161 = vrot.lane.b32.xlu2 %v695_v9, %s644_s2  ;;  %v717_v15 = vld [vmem:[#allocation7] sm:$0xff]  ;;  %s463_s6 = sshll.u32 %s650_s5, 4  ;;  %s465_s9 = sshll.u32 %s848_s3, 4  ;;  %s464_s6 = int_to_ptr.vmem [resolvable:$true] %s463_s6  ;;  %s466_s9 = int_to_ptr.hbm [resolvable:$true] %s465_s9 }
  0x13   :  { %97 = vmatpush.msra.mxu0 %v67_v2 }
  0x15   :  { %98 = vmatpush.msra.mxu0 %v66_v3 }
  0x16   :  { %479 = vmatmul.msk.f32.vlgmr.msra.gmra.mxu0 %vm70_vm0, %v62_v4 }
  0x1e   :  { %480 = vmatmul.msk.f32.gmra.mxu0 %vm70_vm0, %v63_v5 }
  0x26   :  { %481 = vmatmul.msk.f32.gmra.mxu0 %vm70_vm0, %v64_v6 }
  0x2e   :  { %482 = vmatmul.msk.f32.gmra.mxu0 %vm70_vm0, %v65_v7 }
  0x6c   :  { %v729_v16 = vpop.permute.xlu2 %161 }
  0x84   :  { %v731_v17 = vpop.permute.xlu1 %163 }
  0x93   :  { %v701_v10 = vpop.f32.mrf.mxu0 }
  0x94   :  { %v116_v63 = vmul.f32 %v717_v15, %v701_v10 }
  0x9b   :  { %v703_v11 = vpop.f32.mrf.mxu0 }
  0x9c   :  { %v117_v0 = vmul.f32 %v711_v14, %v703_v11 }
  0xa3   :  { %v705_v12 = vpop.f32.mrf.mxu0 }
  0xa4   :  { %197 = vrot.lane.b32.xlu2 %v705_v12, %s645_s27  ;;  %128 = vrot.lane.b32.xlu1 %v705_v12, %s646_s28  ;;  %v118_v6 = vmul.f32 %v695_v9, %v705_v12 }
  0xab   :  { %v709_v13 = vpop.f32.mrf.mxu0 }
  0xac   :  { %159 = vrot.lane.b32.xlu2 %v711_v14, %s644_s2  ;;  %195 = vrot.lane.b32.xlu1 %v703_v11, %s645_s27 }
  0xad   :  { %130 = vrot.lane.b32.xlu0 %v709_v13, %s646_s28 }
  0xb4   :  { %157 = vrot.lane.b32.xlu2 %v717_v15, %s644_s2  ;;  %193 = vrot.lane.b32.xlu1 %v701_v10, %s645_s27 }
  0xb5   :  { %199 = vrot.lane.b32.xlu0 %v709_v13, %s645_s27 }
  0xbc   :  { %181 = vrot.lane.b32.xlu2 %v695_v9, %s647_s29 }
  0xbd   :  { %126 = vrot.lane.b32.xlu0 %v703_v11, %s646_s28 }
  0xc5   :  { %124 = vrot.lane.b32.xlu0 %v701_v10, %s646_s28 }
  0xcd   :  { %183 = vrot.lane.b32.xlu0 %v693_v8, %s647_s29 }
  0xfe   :  { %v198_v18 = vpop.permute.xlu2 %197 }
 0x106   :  { %v160_v27 = vpop.permute.xlu2 %159 }
 0x10e   :  { %v158_v33 = vpop.permute.xlu2 %157 }
 0x116   :  { %v733_v19 = vpop.permute.xlu1 %128  ;;  %v182_v37 = vpop.permute.xlu2 %181 }
 0x117   :  { %v207_v20 = vsel %vm148_vm1, %v198_v18, %v733_v19  ;;  %v191_v38 = vmul.f32 %v182_v37, %v705_v12  ;;  %v119_v18 = vmul.f32 %v693_v8, %v709_v13 }
 0x118   :  { %v211_v21 = vmul.f32 %v207_v20, %v729_v16 }
 0x11a   :  { %221 = vrot.lane.b32.xlu0 %v211_v21, %s647_s29 }
 0x11e   :  { %v196_v26 = vpop.permute.xlu1 %195 }
 0x11f   :  { %v739_v22 = vpop.permute.xlu0 %130 }
 0x122   :  { %177 = vrot.lane.b32.xlu0 %v717_v15, %s647_s29 }
 0x126   :  { %v194_v31 = vpop.permute.xlu1 %193 }
 0x127   :  { %v200_v23 = vpop.permute.xlu0 %199 }
 0x128   :  { %v208_v24 = vsel %vm148_vm1, %v200_v23, %v739_v22 }
 0x129   :  { %v212_v25 = vmul.f32 %v208_v24, %v731_v17 }
 0x12b   :  { %223 = vrot.lane.b32.xlu1 %v212_v25, %s647_s29 }
 0x12f   :  { %v127_v28 = vpop.permute.xlu0 %126 }
 0x130   :  { %v206_v29 = vsel %vm148_vm1, %v196_v26, %v127_v28 }
 0x131   :  { %v210_v30 = vmul.f32 %v206_v29, %v160_v27 }
 0x133   :  { %179 = vrot.lane.b32.xlu1 %v711_v14, %s647_s29  ;;  %219 = vrot.lane.b32.xlu2 %v210_v30, %s647_s29 }
 0x137   :  { %v125_v32 = vpop.permute.xlu0 %124 }
 0x138   :  { %v205_v34 = vsel %vm148_vm1, %v194_v31, %v125_v32 }
 0x139   :  { %v209_v35 = vmul.f32 %v205_v34, %v158_v33 }
 0x13b   :  { %217 = vrot.lane.b32.xlu1 %v209_v35, %s647_s29 }
 0x13f   :  { %v184_v36 = vpop.permute.xlu0 %183 }
 0x140   :  { %v192_v41 = vmul.f32 %v184_v36, %v709_v13 }
 0x18c   :  { %v222_v39 = vpop.permute.xlu0 %221 }
 0x18d   :  { %v231_v40 = vadd.f32 %v222_v39, %v191_v38  ;;  %v220_v46 = vpop.permute.xlu2 %219 }
 0x18f   :  { %241 = vrot.lane.b32.xlu0 %v231_v40, %s644_s2 }
 0x194   :  { %v178_v48 = vpop.permute.xlu0 %177 }
 0x195   :  { %v189_v50 = vmul.f32 %v178_v48, %v701_v10 }
 0x197   :  { %138 = vrot.lane.b32.xlu0 %v703_v11, %s648_s30 }
 0x19d   :  { %v224_v42 = vpop.permute.xlu1 %223 }
 0x19e   :  { %v232_v43 = vadd.f32 %v224_v42, %v192_v41 }
 0x19f   :  { %142 = vrot.lane.b32.xlu0 %v709_v13, %s648_s30 }
 0x1a0   :  { %243 = vrot.lane.b32.xlu2 %v232_v43, %s644_s2 }
 0x1a5   :  { %v180_v44 = vpop.permute.xlu1 %179 }
 0x1a6   :  { %v190_v45 = vmul.f32 %v180_v44, %v703_v11 }
 0x1a7   :  { %249 = vrot.lane.b32.xlu0 %v695_v9, %s649_s4 }
 0x1a8   :  { %v230_v47 = vadd.f32 %v220_v46, %v190_v45  ;;  %136 = vrot.lane.b32.xlu2 %v701_v10, %s648_s30 }
 0x1aa   :  { %239 = vrot.lane.b32.xlu1 %v230_v47, %s644_s2 }
 0x1ad   :  { %v218_v49 = vpop.permute.xlu1 %217 }
 0x1ae   :  { %v229_v51 = vadd.f32 %v218_v49, %v189_v50 }
 0x1b0   :  { %140 = vrot.lane.b32.xlu2 %v705_v12, %s648_s30 }
 0x1b2   :  { %237 = vrot.lane.b32.xlu1 %v229_v51, %s644_s2  ;;  %v516_v51 = vpack.i.bf16 %v701_v10, %v703_v11 }
 0x1b8   :  { %247 = vrot.lane.b32.xlu2 %v711_v14, %s649_s4 }
 0x1ba   :  { %245 = vrot.lane.b32.xlu1 %v717_v15, %s649_s4 }
 0x1c2   :  { %251 = vrot.lane.b32.xlu1 %v693_v8, %s649_s4 }
 0x1fa   :  { %v244_v52 = vpop.permute.xlu2 %243 }
 0x1fb   :  { %483 = vmatpush.xpose.msk.msra.mxu1 %vm70_vm0, %v244_v52  ;;  %495 = vmatpush.xpose.msk.msra.mxu3 %vm70_vm0, %v244_v52 }
 0x201   :  { %v242_v53 = vpop.permute.xlu0 %241 }
 0x202   :  { %484 = vmatpush.xpose.msk.msra.mxu1 %vm70_vm0, %v242_v53  ;;  %496 = vmatpush.xpose.msk.msra.mxu3 %vm70_vm0, %v242_v53  ;;  %v137_v54 = vpop.permute.xlu2 %136 }
 0x203   :  { %v149_v57 = vsel %vm148_vm1, %v125_v32, %v137_v54  ;;  %v511_v32 = vpack.i.bf16 %v705_v12, %v709_v13 }
 0x204   :  { %v169_v59 = vmul.f32 %v158_v33, %v149_v57 }
 0x206   :  { %v173_v1 = vadd.f32 %v169_v59, %v116_v63 }
 0x209   :  { %v139_v55 = vpop.permute.xlu0 %138 }
 0x20a   :  { %v150_v58 = vsel %vm148_vm1, %v127_v28, %v139_v55  ;;  %v141_v61 = vpop.permute.xlu2 %140 }
 0x20b   :  { %v170_v60 = vmul.f32 %v160_v27, %v150_v58  ;;  %v151_v3 = vsel %vm148_vm1, %v733_v19, %v141_v61 }
 0x20c   :  { %v171_v4 = vmul.f32 %v729_v16, %v151_v3 }
 0x20d   :  { %v174_v2 = vadd.f32 %v170_v60, %v117_v0 }
 0x20e   :  { %v175_v7 = vadd.f32 %v171_v4, %v118_v6 }
 0x211   :  { %v143_v5 = vpop.permute.xlu0 %142 }
 0x212   :  { %v152_v14 = vsel %vm148_vm1, %v739_v22, %v143_v5  ;;  %v248_v9 = vpop.permute.xlu2 %247 }
 0x213   :  { %v172_v15 = vmul.f32 %v731_v17, %v152_v14 }
 0x215   :  { %v176_v19 = vadd.f32 %v172_v15, %v119_v18 }
 0x219   :  { %v250_v26 = vpop.permute.xlu0 %249 }
 0x21c   :  { %v240_v56 = vpop.permute.xlu1 %239 }
 0x21d   :  { %485 = vmatpush.xpose.msk.msra.mxu1 %vm70_vm0, %v240_v56  ;;  %497 = vmatpush.xpose.msk.msra.mxu3 %vm70_vm0, %v240_v56 }
 0x224   :  { %v238_v62 = vpop.permute.xlu1 %237 }
 0x225   :  { %486 = vmatpush.xpose.msk.msra.mxu1 %vm70_vm0, %v238_v62  ;;  %498 = vmatpush.xpose.msk.msra.mxu3 %vm70_vm0, %v238_v62 }
 0x228   :  { %487 = vmatmul.msk.f32.vlgmr.msra.gmra.mxu1 %vm70_vm0, %v173_v1  ;;  %488 = vmatmul.msk.f32.vlgmr.msra.gmra.mxu3 %vm70_vm0, %v174_v2 }
 0x22c   :  { %v246_v20 = vpop.permute.xlu1 %245 }
 0x230   :  { %489 = vmatmul.msk.f32.gmra.mxu3 %vm70_vm0, %v175_v7 }
 0x234   :  { %v252_v28 = vpop.permute.xlu1 %251 }
 0x238   :  { %490 = vmatmul.msk.f32.gmra.mxu3 %vm70_vm0, %v176_v19 }
 0x2a5   :  { %v294_v16 = vpop.f32.mrf.mxu1 }
 0x2a6   :  { %v295_v21 = vadd.f32 %v294_v16, %v246_v20 }
 0x2a8   :  { %v306_v23 = vsel %vm70_vm0, %v295_v21, -inf }
 0x2a9   :  { %307 = vmax.xlane.f32.xlu2 %v306_v23 }
 0x2ab   :  { %v297_v24 = vpop.f32.mrf.mxu3 }
 0x2ac   :  { %v298_v25 = vadd.f32 %v297_v24, %v248_v9 }
 0x2ae   :  { %v309_v22 = vsel %vm70_vm0, %v298_v25, -inf }
 0x2af   :  { %310 = vmax.xlane.f32.xlu0 %v309_v22 }
 0x2b3   :  { %v300_v17 = vpop.f32.mrf.mxu3 }
 0x2b4   :  { %v301_v27 = vadd.f32 %v300_v17, %v250_v26 }
 0x2b6   :  { %v312_v8 = vsel %vm70_vm0, %v301_v27, -inf }
 0x2b7   :  { %313 = vmax.xlane.f32.xlu1 %v312_v8 }
 0x2bb   :  { %v303_v29 = vpop.f32.mrf.mxu3 }
 0x2bc   :  { %v304_v30 = vadd.f32 %v303_v29, %v252_v28 }
 0x2be   :  { %v315_v31 = vsel %vm70_vm0, %v304_v30, -inf }
 0x2bf   :  { %316 = vmax.xlane.f32.xlu2 %v315_v31 }
 0x2d0   :  { %512 = vrot.lane.b32.xlu1 %v511_v32, %s649_s4 }
 0x31c   :  { %v308_v33 = vpop.xlane.xlu2 %307 }
 0x31d   :  { %v318_v34 = vsub.f32 %v295_v21, %v308_v33 }
 0x31f   :  { %v322_v35 = vmul.f32 1.442695, %v318_v34 }
 0x321   :  { %521 = vpow2.f32 %v322_v35 }
 0x322   :  { %v311_v36 = vpop.xlane.xlu0 %310 }
 0x323   :  { %v319_v37 = vsub.f32 %v298_v25, %v311_v36 }
 0x325   :  { %v324_v38 = vmul.f32 1.442695, %v319_v37 }
 0x327   :  { %v808_v39 = vpop.eup %521  ;;  %523 = vpow2.f32 %v324_v38 }
 0x328   :  { %v330_v40 = vsel %vm70_vm0, %v808_v39, 0.0 }
 0x329   :  { %331 = vadd.xlane.f32.xlu2 %v330_v40 }
 0x32a   :  { %v314_v41 = vpop.xlane.xlu1 %313 }
 0x32b   :  { %v320_v42 = vsub.f32 %v301_v27, %v314_v41 }
 0x32d   :  { %v812_v43 = vpop.eup %523  ;;  %v326_v12 = vmul.f32 1.442695, %v320_v42 }
 0x32e   :  { %v333_v13 = vsel %vm70_vm0, %v812_v43, 0.0 }
 0x32f   :  { %525 = vpow2.f32 %v326_v12  ;;  %334 = vadd.xlane.f32.xlu0 %v333_v13 }
 0x332   :  { %v317_v44 = vpop.xlane.xlu2 %316 }
 0x333   :  { %v321_v45 = vsub.f32 %v304_v30, %v317_v44 }
 0x335   :  { %v816_v46 = vpop.eup %525  ;;  %v328_v47 = vmul.f32 1.442695, %v321_v45 }
 0x336   :  { %v336_v48 = vsel %vm70_vm0, %v816_v46, 0.0 }
 0x337   :  { %527 = vpow2.f32 %v328_v47  ;;  %337 = vadd.xlane.f32.xlu2 %v336_v48 }
 0x33d   :  { %v820_v49 = vpop.eup %527 }
 0x33e   :  { %v339_v50 = vsel %vm70_vm0, %v820_v49, 0.0 }
 0x33f   :  { %340 = vadd.xlane.f32.xlu2 %v339_v50 }
 0x342   :  { %v513_v52 = vpop.permute.xlu1 %512 }
 0x343   :  { %517 = vrot.lane.b32.xlu0 %v516_v51, %s649_s4  ;;  %v514_v53 = vunpack.i.l.bf16 %v513_v52  ;;  %v515_v54 = vunpack.i.h.bf16 %v513_v52 }
 0x345   :  { %438 = vmatpush.msra.mxu2 %v514_v53 }
 0x347   :  { %439 = vmatpush.msra.mxu2 %v515_v54 }
 0x39c   :  { %v332_v55 = vpop.xlane.xlu2 %331 }
 0x39d   :  { %529 = vrcp.f32 %v332_v55  ;;  %v353_v0 = vand.u32 2147483648, %v332_v55  ;;  %vm347_vm3 = vweird.f32 %v332_v55  ;;  %v351_v2 = vand.u32 2147483647, %v332_v55 }
 0x39f   :  { %v354_v7 = vor.u32 1.1754944e-38, %v353_v0  ;;  %vm352_vm5 = vcmp.eq.f32.partialorder %v351_v2, 8.507059e+37 }
 0x3a2   :  { %v335_v56 = vpop.xlane.xlu0 %334 }
 0x3a3   :  { %v530_v57 = vpop.eup %529  ;;  %531 = vrcp.f32 %v335_v56  ;;  %v368_v16 = vand.u32 2147483648, %v335_v56  ;;  %vm362_vm7 = vweird.f32 %v335_v56  ;;  %v366_v24 = vand.u32 2147483647, %v335_v56 }
 0x3a4   :  { %v343_v58 = vmul.f32 %v530_v57, %v332_v55  ;;  %vm348_vm2 = vweird.f32 %v530_v57 }
 0x3a5   :  { %vm349_vm4 = vmor %vm347_vm3, %vm348_vm2  ;;  %v369_v17 = vor.u32 1.1754944e-38, %v368_v16  ;;  %vm367_vm9 = vcmp.eq.f32.partialorder %v366_v24, 8.507059e+37 }
 0x3a6   :  { %v344_v59 = vsub.f32 1.0, %v343_v58 }
 0x3a8   :  { %v345_v62 = vmul.f32 %v530_v57, %v344_v59 }
 0x3a9   :  { %v532_v60 = vpop.eup %531 }
 0x3aa   :  { %v338_v61 = vpop.xlane.xlu2 %337  ;;  %v358_v63 = vmul.f32 %v532_v60, %v335_v56  ;;  %v346_v11 = vadd.f32 %v530_v57, %v345_v62  ;;  %vm363_vm6 = vweird.f32 %v532_v60 }
 0x3ab   :  { %533 = vrcp.f32 %v338_v61  ;;  %vm364_vm8 = vmor %vm362_vm7, %vm363_vm6  ;;  %v383_v29 = vand.u32 2147483648, %v338_v61  ;;  %vm377_vm11 = vweird.f32 %v338_v61  ;;  %v381_v31 = vand.u32 2147483647, %v338_v61 }
 0x3ac   :  { %v359_v10 = vsub.f32 1.0, %v358_v63  ;;  %v350_v6 = vsel %vm349_vm4, %v530_v57, %v346_v11 }
 0x3ad   :  { %v355_v18 = vsel %vm352_vm5, %v354_v7, %v350_v6  ;;  %v384_v34 = vor.u32 1.1754944e-38, %v383_v29  ;;  %vm382_vm13 = vcmp.eq.f32.partialorder %v381_v31, 8.507059e+37 }
 0x3ae   :  { %v360_v4 = vmul.f32 %v532_v60, %v359_v10  ;;  %v356_v9 = vmul.f32 %v808_v39, %v355_v18 }
 0x3b0   :  { %v361_v20 = vadd.f32 %v532_v60, %v360_v4 }
 0x3b1   :  { %v534_v1 = vpop.eup %533 }
 0x3b2   :  { %v341_v3 = vpop.xlane.xlu2 %340  ;;  %v373_v5 = vmul.f32 %v534_v1, %v338_v61  ;;  %v365_v26 = vsel %vm364_vm8, %v532_v60, %v361_v20  ;;  %vm378_vm10 = vweird.f32 %v534_v1 }
 0x3b3   :  { %535 = vrcp.f32 %v341_v3  ;;  %v370_v27 = vsel %vm367_vm9, %v369_v17, %v365_v26  ;;  %vm379_vm12 = vmor %vm377_vm11, %vm378_vm10  ;;  %v398_v37 = vand.u32 2147483648, %v341_v3  ;;  %vm392_vm15 = vweird.f32 %v341_v3 }
 0x3b4   :  { %v374_v19 = vsub.f32 1.0, %v373_v5  ;;  %v371_v30 = vmul.f32 %v812_v43, %v370_v27  ;;  %v396_v38 = vand.u32 2147483647, %v341_v3 }
 0x3b5   :  { %v518_v14 = vpop.permute.xlu0 %517  ;;  %v399_v41 = vor.u32 1.1754944e-38, %v398_v37 }
 0x3b6   :  { %v519_v15 = vunpack.i.l.bf16 %v518_v14  ;;  %v520_v21 = vunpack.i.h.bf16 %v518_v14  ;;  %v375_v25 = vmul.f32 %v534_v1, %v374_v19  ;;  %vm397_vm2 = vcmp.eq.f32.partialorder %v396_v38, 8.507059e+37 }
 0x3b8   :  { %440 = vmatpush.msra.mxu2 %v519_v15  ;;  %v376_v28 = vadd.f32 %v534_v1, %v375_v25 }
 0x3b9   :  { %v536_v23 = vpop.eup %535 }
 0x3ba   :  { %441 = vmatpush.msra.mxu2 %v520_v21  ;;  %v388_v22 = vmul.f32 %v536_v23, %v341_v3  ;;  %v380_v33 = vsel %vm379_vm12, %v534_v1, %v376_v28  ;;  %vm393_vm14 = vweird.f32 %v536_v23 }
 0x3bb   :  { %491 = vmatmul.msk.f32.vlgmr.msra.gmra.mxu2 %vm70_vm0, %v356_v9  ;;  %v385_v35 = vsel %vm382_vm13, %v384_v34, %v380_v33  ;;  %vm394_vm1 = vmor %vm392_vm15, %vm393_vm14 }
 0x3bc   :  { %v389_v8 = vsub.f32 1.0, %v388_v22  ;;  %v386_v39 = vmul.f32 %v816_v46, %v385_v35 }
 0x3be   :  { %v390_v32 = vmul.f32 %v536_v23, %v389_v8 }
 0x3c0   :  { %v391_v36 = vadd.f32 %v536_v23, %v390_v32 }
 0x3c2   :  { %v395_v40 = vsel %vm394_vm1, %v536_v23, %v391_v36 }
 0x3c3   :  { %492 = vmatmul.msk.f32.gmra.mxu2 %vm70_vm0, %v371_v30  ;;  %v400_v42 = vsel %vm397_vm2, %v399_v41, %v395_v40 }
 0x3c4   :  { %v401_v43 = vmul.f32 %v820_v49, %v400_v42 }
 0x3cb   :  { %493 = vmatmul.msk.f32.gmra.mxu2 %vm70_vm0, %v386_v39 }
 0x3d3   :  { %494 = vmatmul.msk.f32.gmra.mxu2 %vm70_vm0, %v401_v43 }
 0x43e   :  { %v443_v12 = vpop.f32.mrf.mxu2 }
 0x43f   :  { %455 = vst.msk [vmem:[#allocation8] sm:$0xff] %vm70_vm0, %v443_v12 }
 0x446   :  { %v446_v13 = vpop.f32.mrf.mxu2 }
 0x447   :  { %456 = vst.msk [vmem:[#allocation8 + $0x8] sm:$0xff] %vm70_vm0, %v446_v13 }
 0x44e   :  { %v449_v44 = vpop.f32.mrf.mxu2 }
 0x44f   :  { %457 = vst.msk [vmem:[#allocation8 + $0x10] sm:$0xff] %vm70_vm0, %v449_v44 }
 0x456   :  { %v452_v45 = vpop.f32.mrf.mxu2 }
 0x457   :  { %458 = vst.msk [vmem:[#allocation8 + $0x18] sm:$0xff] %vm70_vm0, %v452_v45 }
 0x458   :  { %471 = dma.vmem_to_hbm [thread:$0]  %s464_s6, 512, %s466_s9, [#allocation4], %s640_s20, %s640_s20, %s641_s21  }
 0x459   :  { %637 = dma.done.wait [#allocation4], 512  }
 0x45a   :  { %638 = vsyncadd [#allocation4], 4294966784 }
 0x45b   :  { %476 = vsyncpa [#allocation3], 1 }
 0x45c   :  { %477 = vsyncpa [#allocation6], 1 }
 0x45d   :  { %478 = vsyncpa [#allocation4], 1 }

</bundles_post_ra>
